<compile_context>
chip_gen: v7x
topology: tpu7x:2x2x1
jax: 0.10.0
libtpu: 0.0.40
codegen_flags: <defaults>
</compile_context>

<pallas_src>
import functools
import math

import jax
import jax.numpy as jnp
from jax import lax
from jax.experimental import pallas as pl
from jax.experimental.pallas import tpu as pltpu

IN_FEATURES = 4
HIDDEN_LAYER = 48
OUT_FEATURES = 2

_TB_MAX_DEFAULT = 1024      # rows per grid step (multiple of 128)
_TARGET_STEPS = 8           # aim for >= this many grid steps per call
_MIN_PALLAS_BATCH = 1024    # below this, plain XLA beats the kernel launch


def _round_up(n, m):
    return ((n + m - 1) // m) * m


def _default_tanh_dtype():
    """bf16 tanh only where the EUP supports it (v6e / v7x); f32 elsewhere."""
    try:
        kind = jax.devices()[0].device_kind.lower()
    except Exception:
        return jnp.float32
    if ("v6" in kind) or ("v7" in kind):
        return jnp.bfloat16
    return jnp.float32


def _mlp_kernel(x_ref, w1_ref, b1_ref, w2_ref, b2_ref, o_ref, *,
                mxu_dtype, tanh_dtype):
    x = x_ref[...].astype(mxu_dtype)       # (TB, 4)   contiguous row tile
    w1 = w1_ref[...].astype(mxu_dtype)     # (48, 4)   VMEM-resident
    w2 = w2_ref[...].astype(mxu_dtype)     # (2, 48)   VMEM-resident
    b1 = b1_ref[...]                       # (48, 1)   f32
    b2 = b2_ref[...]                       # (2, 1)    f32

    # Full f32 decomposition only on the f32 correctness path; bf16 operands
    # need (and get) a single MXU pass either way.
    prec = lax.Precision.HIGHEST if mxu_dtype == jnp.float32 else None

    # Layer 1 on the MXU: contract the K=4 axis of w1 (48,4) with x (TB,4)
    # -> (48, TB) with batch on lanes, f32 accumulate; one VPU add for bias.
    acc = lax.dot_general(
        w1, x, dimension_numbers=(((1,), (1,)), ((), ())),
        preferred_element_type=jnp.float32, precision=prec) + b1

    # tanh on the EUP (bf16 on v6e/v7x, f32 on v5e); result staged in MXU dtype.
    h = jnp.tanh(acc.astype(tanh_dtype)).astype(mxu_dtype)     # (48, TB)

    # Layer 2 on the MXU: (2,48) @ (48,TB) -> (2,TB), f32 accumulate.
    out = jnp.dot(w2, h, preferred_element_type=jnp.float32, precision=prec) + b2
    o_ref[...] = out.astype(o_ref.dtype)


def _pallas_forward(x, w1, b1, w2, b2, *, tb_max, target_steps,
                    mxu_dtype, tanh_dtype):
    B = x.shape[0]
    B128 = _round_up(max(B, 1), 128)
    # Lane-dense tile (multiple of 128), capped at tb_max, sized so the grid
    # has >= target_steps steps whenever the batch is large enough.
    TB = max(128, min(_round_up(tb_max, 128),
                      _round_up(-(-B128 // target_steps), 128)))
    B_pad = _round_up(B, TB)               # waste bounded by TB-1 (<1024 rows)
    grid = (B_pad // TB,)

    x_pad = x.astype(jnp.float32)
    if B_pad != B:
        x_pad = jnp.pad(x_pad, ((0, B_pad - B), (0, 0)))

    flops = 2 * B_pad * (IN_FEATURES * HIDDEN_LAYER + HIDDEN_LAYER * OUT_FEATURES)
    bytes_accessed = 4 * (B_pad * (IN_FEATURES + OUT_FEATURES)
                          + HIDDEN_LAYER * IN_FEATURES + HIDDEN_LAYER
                          + OUT_FEATURES * HIDDEN_LAYER + OUT_FEATURES)

    kernel = functools.partial(_mlp_kernel, mxu_dtype=mxu_dtype,
                               tanh_dtype=tanh_dtype)

    outT = pl.pallas_call(
        kernel,
        out_shape=jax.ShapeDtypeStruct((OUT_FEATURES, B_pad), jnp.float32),
        grid=grid,
        in_specs=[
            pl.BlockSpec((TB, IN_FEATURES), lambda i: (i, 0)),             # x rows
            pl.BlockSpec((HIDDEN_LAYER, IN_FEATURES), lambda i: (0, 0)),   # w1
            pl.BlockSpec((HIDDEN_LAYER, 1), lambda i: (0, 0)),             # b1
            pl.BlockSpec((OUT_FEATURES, HIDDEN_LAYER), lambda i: (0, 0)),  # w2
            pl.BlockSpec((OUT_FEATURES, 1), lambda i: (0, 0)),             # b2
        ],
        out_specs=pl.BlockSpec((OUT_FEATURES, TB), lambda i: (0, i)),
        compiler_params=pltpu.CompilerParams(
            dimension_semantics=("parallel",)),      # megacore sharding on v7x
        cost_estimate=pl.CostEstimate(
            flops=flops,
            transcendentals=B_pad * HIDDEN_LAYER,
            bytes_accessed=bytes_accessed),
    )(x_pad, w1, b1, w2, b2)

    # Back to (B, 2); the output transpose is only 8 B/row, keep it outside.
    return outT[:, :B].T


def network_forward(x, params, *, force_pallas=False, tb_max=_TB_MAX_DEFAULT,
                    target_steps=_TARGET_STEPS, mxu_dtype=jnp.bfloat16,
                    tanh_dtype=None):
    """Forward pass of the DQN Network. x: (B, 4) -> (B, 2)."""
    w1, b1, w2, b2 = params
    B = x.shape[0]
    if (B < _MIN_PALLAS_BATCH) and not force_pallas:
        # Tiny batch: pallas_call launch + DMA setup dwarfs the compute.
        return jnp.tanh(x @ w1.T + b1.T) @ w2.T + b2.T
    if tanh_dtype is None:
        tanh_dtype = _default_tanh_dtype()
    return _pallas_forward(x, w1, b1, w2, b2, tb_max=tb_max,
                           target_steps=target_steps, mxu_dtype=mxu_dtype,
                           tanh_dtype=tanh_dtype)


def init_params(key):
    """PyTorch nn.Linear default init: U(-1/sqrt(fan_in), 1/sqrt(fan_in)).
    Stored as (out_features, in_features) / (out_features, 1)."""
    k1, k2, k3, k4 = jax.random.split(key, 4)
    bound1 = 1.0 / math.sqrt(IN_FEATURES)
    bound2 = 1.0 / math.sqrt(HIDDEN_LAYER)
    w1 = jax.random.uniform(k1, (HIDDEN_LAYER, IN_FEATURES), jnp.float32, -bound1, bound1)
    b1 = jax.random.uniform(k2, (HIDDEN_LAYER, 1), jnp.float32, -bound1, bound1)
    w2 = jax.random.uniform(k3, (OUT_FEATURES, HIDDEN_LAYER), jnp.float32, -bound2, bound2)
    b2 = jax.random.uniform(k4, (OUT_FEATURES, 1), jnp.float32, -bound2, bound2)
    return w1, b1, w2, b2


if __name__ == "__main__":
    key = jax.random.PRNGKey(0)
    k_params, kx1, kx2, kx3 = jax.random.split(key, 4)
    params = init_params(k_params)
    w1, b1, w2, b2 = params

    def ref_fn(x):  # full-precision f32 reference
        h = jnp.tanh(jnp.dot(x, w1.T, precision=lax.Precision.HIGHEST) + b1.T)
        return jnp.dot(h, w2.T, precision=lax.Precision.HIGHEST) + b2.T

    # 1) tiny batch, forced through Pallas, f32 MXU + f32 tanh -> tight check
    x_small = jax.random.normal(kx1, (2, IN_FEATURES), jnp.float32)
    out_f32 = jax.block_until_ready(network_forward(
        x_small, params, force_pallas=True,
        mxu_dtype=jnp.float32, tanh_dtype=jnp.float32))
    assert out_f32.shape == (2, OUT_FEATURES)
    assert jnp.allclose(out_f32, ref_fn(x_small), atol=1e-4), "mismatch f32 (B=2)"

    # 2) default fast path (bf16 MXU operands, f32 accumulate) on same inputs
    out_bf16 = jax.block_until_ready(
        network_forward(x_small, params, force_pallas=True))
    assert jnp.allclose(out_bf16, ref_fn(x_small), atol=2e-2), "mismatch bf16 (B=2)"

    # 3) multi-step grid (3 tiles of 128 rows) exercising the pipelined path
    x_med = jax.random.normal(kx2, (384, IN_FEATURES), jnp.float32)
    out_med = jax.block_until_ready(network_forward(
        x_med, params, force_pallas=True, tb_max=128))
    assert out_med.shape == (384, OUT_FEATURES)
    assert jnp.allclose(out_med, ref_fn(x_med), atol=2e-2), "mismatch (B=384)"

    # 4) non-multiple-of-128 batch exercising padding + TB selection (8 steps)
    x_big = jax.random.normal(kx3, (1000, IN_FEATURES), jnp.float32)
    out_big = jax.block_until_ready(
        network_forward(x_big, params, force_pallas=True))
    assert out_big.shape == (1000, OUT_FEATURES)
    assert jnp.allclose(out_big, ref_fn(x_big), atol=2e-2), "mismatch (B=1000)"

    # 5) default dispatch (tiny batch -> plain JAX fallback) stays consistent
    out_dispatch = jax.block_until_ready(network_forward(x_small, params))
    assert jnp.allclose(out_dispatch, ref_fn(x_small), atol=2e-2), "dispatch mismatch"

    print("KERNEL_OK")
</pallas_src>

<mosaic_0001>
module attributes {stable_mosaic.version = 11 : i64} {
  func.func @_mlp_kernel(%arg0: i32, %arg1: memref<128x4xf32, #tpu.memory_space<vmem>>, %arg2: memref<48x4xf32, #tpu.memory_space<vmem>>, %arg3: memref<48x1xf32, #tpu.memory_space<vmem>>, %arg4: memref<2x48xf32, #tpu.memory_space<vmem>>, %arg5: memref<2x1xf32, #tpu.memory_space<vmem>>, %arg6: memref<2x128xf32, #tpu.memory_space<vmem>>) attributes {dimension_semantics = [#tpu.dimension_semantics<parallel>], iteration_bounds = array<i64: 1>, scalar_prefetch = 0 : i64, scratch_operands = 0 : i64, tpu.core_type = #tpu.core_type<tc>, window_params = [{transform_indices = @transform_0, window_bounds = array<i64: 128, 4>}, {pipeline_mode = #tpu.pipeline_mode<synchronous>, transform_indices = @transform_1, window_bounds = array<i64: 48, 4>}, {pipeline_mode = #tpu.pipeline_mode<synchronous>, transform_indices = @transform_2, window_bounds = array<i64: 48, 1>}, {pipeline_mode = #tpu.pipeline_mode<synchronous>, transform_indices = @transform_3, window_bounds = array<i64: 2, 48>}, {pipeline_mode = #tpu.pipeline_mode<synchronous>, transform_indices = @transform_4, window_bounds = array<i64: 2, 1>}, {transform_indices = @transform_5, window_bounds = array<i64: 2, 128>}]} {
    %c0 = arith.constant 0 : index
    %c0_0 = arith.constant 0 : index
    %0 = vector.load %arg1[%c0, %c0_0] : memref<128x4xf32, #tpu.memory_space<vmem>>, vector<128x4xf32>
    %c0_1 = arith.constant 0 : index
    %c0_2 = arith.constant 0 : index
    %1 = vector.load %arg2[%c0_1, %c0_2] : memref<48x4xf32, #tpu.memory_space<vmem>>, vector<48x4xf32>
    %c0_3 = arith.constant 0 : index
    %c0_4 = arith.constant 0 : index
    %2 = vector.load %arg4[%c0_3, %c0_4] : memref<2x48xf32, #tpu.memory_space<vmem>>, vector<2x48xf32>
    %c0_5 = arith.constant 0 : index
    %c0_6 = arith.constant 0 : index
    %3 = vector.load %arg3[%c0_5, %c0_6] : memref<48x1xf32, #tpu.memory_space<vmem>>, vector<48x1xf32>
    %c0_7 = arith.constant 0 : index
    %c0_8 = arith.constant 0 : index
    %4 = vector.load %arg5[%c0_7, %c0_8] : memref<2x1xf32, #tpu.memory_space<vmem>>, vector<2x1xf32>
    %cst = arith.constant dense<0.000000e+00> : vector<48x128xf32>
    %5 = tpu.matmul %1, %0, %cst {dimension_numbers = #tpu.dot_dimension_numbers<[1], [1], [0], [0], [0, 0, 1, 0], [], []>, precision = #tpu.contract_precision<fp32>} : vector<48x4xf32>, vector<128x4xf32>, vector<48x128xf32> -> vector<48x128xf32>
    %6 = vector.broadcast %3 : vector<48x1xf32> to vector<48x128xf32>
    %7 = arith.addf %5, %6 : vector<48x128xf32>
    %8 = math.tanh %7 : vector<48x128xf32>
    %cst_9 = arith.constant dense<0.000000e+00> : vector<2x128xf32>
    %9 = tpu.matmul %2, %8, %cst_9 {dimension_numbers = #tpu.dot_dimension_numbers<[1], [0], [0], [1], [0, 0, 1, 1], [], []>, precision = #tpu.contract_precision<fp32>} : vector<2x48xf32>, vector<48x128xf32>, vector<2x128xf32> -> vector<2x128xf32>
    %10 = vector.broadcast %4 : vector<2x1xf32> to vector<2x128xf32>
    %11 = arith.addf %9, %10 : vector<2x128xf32>
    %c0_10 = arith.constant 0 : index
    %c0_11 = arith.constant 0 : index
    %12 = vector.load %arg6[%c0_10, %c0_11] : memref<2x128xf32, #tpu.memory_space<vmem>>, vector<2x128xf32>
    tpu.vector_store %arg6[%c0_10, %c0_11], %11 {strides = array<i32>} : memref<2x128xf32, #tpu.memory_space<vmem>>, vector<2x128xf32>,
    return
  }
  func.func @transform_0(%arg0: i32) -> (i32, i32) {
    %c0_i32 = arith.constant 0 : i32
    %c0_i32_0 = arith.constant 0 : i32
    return %arg0, %c0_i32 : i32, i32
  }
  func.func @transform_1(%arg0: i32) -> (i32, i32) {
    %c0_i32 = arith.constant 0 : i32
    %c0_i32_0 = arith.constant 0 : i32
    %c0_i32_1 = arith.constant 0 : i32
    return %c0_i32, %c0_i32_0 : i32, i32
  }
  func.func @transform_2(%arg0: i32) -> (i32, i32) {
    %c0_i32 = arith.constant 0 : i32
    %c0_i32_0 = arith.constant 0 : i32
    %c0_i32_1 = arith.constant 0 : i32
    return %c0_i32, %c0_i32_0 : i32, i32
  }
  func.func @transform_3(%arg0: i32) -> (i32, i32) {
    %c0_i32 = arith.constant 0 : i32
    %c0_i32_0 = arith.constant 0 : i32
    %c0_i32_1 = arith.constant 0 : i32
    return %c0_i32, %c0_i32_0 : i32, i32
  }
  func.func @transform_4(%arg0: i32) -> (i32, i32) {
    %c0_i32 = arith.constant 0 : i32
    %c0_i32_0 = arith.constant 0 : i32
    %c0_i32_1 = arith.constant 0 : i32
    return %c0_i32, %c0_i32_0 : i32, i32
  }
  func.func @transform_5(%arg0: i32) -> (i32, i32) {
    %c0_i32 = arith.constant 0 : i32
    %c0_i32_0 = arith.constant 0 : i32
    return %c0_i32, %arg0 : i32, i32
  }
}

</mosaic_0001>

<bundles_post_ra>
// kernel: tpu_custom_call.1
= control target key start
LH: loop header
LB: loop body
LE: loop exit
PB: predicated region body
PF: predicated region fallthrough
CT: control target
= control target key end

     0   :  { %vm81_vm0 = vcmask 31744   ;;  %s2935_s0 = inlined_call_operand.vmem [shape: f32[128,4], index: 0, kind: input, shape index: {}]   ;;  %s2936_s1 = inlined_call_operand.vmem [shape: f32[48,4], index: 1, kind: input, shape index: {}]   ;;  %s2937_s2 = inlined_call_operand.vmem [shape: f32[48,1], index: 2, kind: input, shape index: {}]   ;;  %s2938_s3 = inlined_call_operand.vmem [shape: f32[2,48], index: 3, kind: input, shape index: {}]   ;;  %s2939_s4 = inlined_call_operand.vmem [shape: f32[2,1], index: 4, kind: input, shape index: {}]   ;;  %s2940_s5 = inlined_call_operand.hbm [shape: f32[2,128], index: 5, kind: output, shape index: {}]  }
   0x1   :  { %v21_v0 = vld [vmem:[%s2935_s0] sm:$0xff]  ;;  %v22_v1 = vld [vmem:[%s2935_s0 + $0x8] sm:$0xff]  ;;  %v23_v2 = vld [vmem:[%s2935_s0 + $0x10] sm:$0xff] }
   0x2   :  { %v101_v3 = vsel %vm81_vm0, %v21_v0, 0  ;;  %v104_v4 = vsel %vm81_vm0, %v22_v1, 0  ;;  %v24_v5 = vld [vmem:[%s2935_s0 + $0x18] sm:$0xff]  ;;  %v107_v6 = vsel %vm81_vm0, %v23_v2, 0  ;;  %v25_v7 = vld [vmem:[%s2935_s0 + $0x20] sm:$0xff]  ;;  %v26_v8 = vld [vmem:[%s2935_s0 + $0x28] sm:$0xff] }
   0x3   :  { %v149_v9 = vand.u32 4294901760, %v101_v3  ;;  %v152_v10 = vand.u32 4294901760, %v104_v4  ;;  %v110_v11 = vsel %vm81_vm0, %v24_v5, 0  ;;  %v155_v12 = vand.u32 4294901760, %v107_v6  ;;  %v27_v26 = vld [vmem:[%s2935_s0 + $0x30] sm:$0xff]  ;;  %v28_v27 = vld [vmem:[%s2935_s0 + $0x38] sm:$0xff] }
   0x4   :  { %v158_v13 = vand.u32 4294901760, %v110_v11  ;;  %v113_v14 = vsel %vm81_vm0, %v25_v7, 0  ;;  %v116_v15 = vsel %vm81_vm0, %v26_v8, 0 }
   0x5   :  { %v2450_v16 = vpack.c.bf16 %v152_v10, %v149_v9  ;;  %v2452_v17 = vsub.f32 %v101_v3, %v149_v9  ;;  %v2454_v18 = vsub.f32 %v104_v4, %v152_v10  ;;  %v2456_v19 = vsub.f32 %v107_v6, %v155_v12 }
   0x6   :  { %v2458_v20 = vpack.c.bf16 %v158_v13, %v155_v12  ;;  %v2460_v21 = vsub.f32 %v110_v11, %v158_v13  ;;  %v161_v23 = vand.u32 4294901760, %v113_v14  ;;  %v164_v24 = vand.u32 4294901760, %v116_v15 }
   0x7   :  { %v2119_v22 = vpack.c.bf16 %v2454_v18, %v2452_v17  ;;  %2056 = vmatprep.subr.bf16.mxu1 %v2450_v16 }
   0x8   :  { %v2123_v25 = vpack.c.bf16 %v2460_v21, %v2456_v19  ;;  %2058 = vmatpush3.bf16.xpose.msra.mxu1 %v2450_v16 }
   0x9   :  { %2120 = vmatprep.subr.bf16.mxu0 %v2119_v22  ;;  %2060 = vmatprep.subr.bf16.mxu1 %v2458_v20 }
   0xa   :  { %10 = vsyncpa [#allocation3], 0  ;;  %2122 = vmatpush3.bf16.xpose.msra.mxu0 %v2119_v22  ;;  %v2475_v28 = vsub.f32 %v113_v14, %v161_v23  ;;  %v2477_v29 = vsub.f32 %v116_v15, %v164_v24  ;;  %v119_v30 = vsel %vm81_vm0, %v27_v26, 0  ;;  %v122_v31 = vsel %vm81_vm0, %v28_v27, 0  ;;  %v37_v32 = vld [vmem:[%s2936_s1] sm:$0xff]  ;;  %v30_v39 = vld [vmem:[%s2935_s0 + $0x48] sm:$0xff] }
   0xb   :  { %2124 = vmatprep.subr.bf16.mxu0 %v2123_v25  ;;  %v2484_v33 = vpack.c.bf16 %v164_v24, %v161_v23  ;;  %v167_v35 = vand.u32 4294901760, %v119_v30  ;;  %v170_v36 = vand.u32 4294901760, %v122_v31  ;;  %v83_v37 = vsel %vm81_vm0, %v37_v32, 0  ;;  %v29_v38 = vld [vmem:[%s2935_s0 + $0x40] sm:$0xff]  ;;  %v31_v55 = vld [vmem:[%s2935_s0 + $0x50] sm:$0xff]  ;;  %v32_v56 = vld [vmem:[%s2935_s0 + $0x58] sm:$0xff] }
   0xc   :  { %v2127_v34 = vpack.c.bf16 %v2477_v29, %v2475_v28  ;;  %v2496_v40 = vand.u32 4294901760, %v83_v37  ;;  %v125_v44 = vsel %vm81_vm0, %v29_v38, 0  ;;  %v128_v45 = vsel %vm81_vm0, %v30_v39, 0  ;;  %v33_v13 = vld [vmem:[%s2935_s0 + $0x60] sm:$0xff]  ;;  %v34_v14 = vld [vmem:[%s2935_s0 + $0x68] sm:$0xff] }
   0xd   :  { %v2499_v41 = vsub.f32 %v119_v30, %v167_v35  ;;  %v2501_v42 = vsub.f32 %v122_v31, %v170_v36  ;;  %v2508_v46 = vpack.c.bf16 %v170_v36, %v167_v35  ;;  %v292_v48 = vand.u32 4294901760, %v2452_v17  ;;  %v35_v35 = vld [vmem:[%s2935_s0 + $0x70] sm:$0xff]  ;;  %v36_v36 = vld [vmem:[%s2935_s0 + $0x78] sm:$0xff] }
   0xe   :  { %v2504_v43 = vsub.f32 %v83_v37, %v2496_v40  ;;  %v299_v49 = vand.u32 4294901760, %v2454_v18  ;;  %v173_v51 = vand.u32 4294901760, %v125_v44  ;;  %v176_v52 = vand.u32 4294901760, %v128_v45 }
   0xf   :  { %v2131_v50 = vpack.c.bf16 %v2501_v42, %v2499_v41  ;;  %v306_v58 = vand.u32 4294901760, %v2456_v19  ;;  %v313_v59 = vand.u32 4294901760, %v2460_v21  ;;  %v320_v60 = vand.u32 4294901760, %v2475_v28 }
  0x10   :  { %2062 = vmatpush3.bf16.xpose.msra.mxu1 %v2458_v20  ;;  %1833 = vmatprep.mubr.f32.mxu0 %v2504_v43  ;;  %v231_v47 = vand.u32 4294901760, %v2504_v43  ;;  %v2524_v54 = vpack.c.bf16 %v299_v49, %v292_v48  ;;  %v327_v61 = vand.u32 4294901760, %v2477_v29  ;;  %v2537_v62 = vsub.f32 %v125_v44, %v173_v51 }
  0x11   :  { %2064 = vmatprep.subr.bf16.mxu1 %v2484_v33  ;;  %v2539_v63 = vsub.f32 %v128_v45, %v176_v52  ;;  %v2545_v0 = vpack.c.bf16 %v313_v59, %v306_v58  ;;  %v131_v1 = vsel %vm81_vm0, %v31_v55, 0  ;;  %v134_v2 = vsel %vm81_vm0, %v32_v56, 0  ;;  %v39_v56 = vld [vmem:[%s2936_s1 + $0x10] sm:$0xff] }
  0x12   :  { %2126 = vmatpush3.bf16.xpose.msra.mxu0 %v2123_v25  ;;  %v232_v53 = vsub.f32 %v2504_v43, %v231_v47  ;;  %v2553_v3 = vpack.c.bf16 %v327_v61, %v320_v60  ;;  %v2555_v4 = vpack.c.bf16 %v176_v52, %v173_v51  ;;  %v334_v5 = vand.u32 4294901760, %v2499_v41  ;;  %v38_v51 = vld [vmem:[%s2936_s1 + $0x8] sm:$0xff] }
  0x13   :  { %2128 = vmatprep.subr.bf16.mxu0 %v2127_v34  ;;  %v341_v6 = vand.u32 4294901760, %v2501_v42  ;;  %v2135_v7 = vpack.c.bf16 %v2539_v63, %v2537_v62  ;;  %v179_v8 = vand.u32 4294901760, %v131_v1  ;;  %v182_v9 = vand.u32 4294901760, %v134_v2 }
  0x14   :  { %v233_v57 = vand.u32 4294901760, %v232_v53  ;;  %v348_v11 = vand.u32 4294901760, %v2537_v62  ;;  %v355_v12 = vand.u32 4294901760, %v2539_v63  ;;  %v137_v24 = vsel %vm81_vm0, %v33_v13, 0 }
  0x15   :  { %v2565_v10 = vpack.c.bf16 %v341_v6, %v334_v5  ;;  %v2583_v22 = vsub.f32 %v131_v1, %v179_v8  ;;  %v2585_v23 = vsub.f32 %v134_v2, %v182_v9  ;;  %v140_v25 = vsel %vm81_vm0, %v34_v14, 0 }
  0x16   :  { %1751 = vmatprep.mubr.f32.mxu1 %v233_v57  ;;  %v2581_v15 = vpack.c.bf16 %v355_v12, %v348_v11  ;;  %v2589_v26 = vpack.c.bf16 %v182_v9, %v179_v8  ;;  %v185_v30 = vand.u32 4294901760, %v137_v24  ;;  %v188_v31 = vand.u32 4294901760, %v140_v25 }
  0x17   :  { %v2139_v27 = vpack.c.bf16 %v2585_v23, %v2583_v22  ;;  %v362_v32 = vand.u32 4294901760, %v2583_v22  ;;  %v143_v44 = vsel %vm81_vm0, %v35_v35, 0  ;;  %v146_v45 = vsel %vm81_vm0, %v36_v36, 0 }
  0x18   :  { %2066 = vmatpush3.bf16.xpose.msra.mxu1 %v2484_v33  ;;  %v2609_v38 = vsub.f32 %v137_v24, %v185_v30  ;;  %v2611_v39 = vsub.f32 %v140_v25, %v188_v31  ;;  %v191_v53 = vand.u32 4294901760, %v143_v44  ;;  %v194_v55 = vand.u32 4294901760, %v146_v45  ;;  %v41_v25 = vld [vmem:[%s2936_s1 + $0x20] sm:$0xff] }
  0x19   :  { %2068 = vmatprep.subr.bf16.mxu1 %v2508_v46  ;;  %v86_v2 = vsel %vm81_vm0, %v38_v51, 0  ;;  %v89_v14 = vsel %vm81_vm0, %v39_v56, 0  ;;  %v300_v35 = vsub.f32 %v2454_v18, %v299_v49  ;;  %v42_v51 = vld [vmem:[%s2936_s1 + $0x28] sm:$0xff]  ;;  %vm2393_vm1 = vmmov 0  }
  0x1a   :  { %2130 = vmatpush3.bf16.xpose.msra.mxu0 %v2127_v34  ;;  %v2946_v34 = vand.u32 4294901760, %v2585_v23  ;;  %v2143_v52 = vpack.c.bf16 %v2611_v39, %v2609_v38  ;;  %v2944_v57 = vand.u32 4294901760, %v2609_v38  ;;  %v2941_v1 = vand.u32 4294901760, %v2611_v39 }
  0x1b   :  { %2132 = vmatprep.subr.bf16.mxu0 %v2131_v50  ;;  %v2639_v9 = vsub.f32 %v143_v44, %v191_v53  ;;  %v2641_v13 = vsub.f32 %v146_v45, %v194_v55  ;;  %v2644_v24 = vand.u32 4294901760, %v86_v2  ;;  %v2658_v36 = vand.u32 4294901760, %v89_v14 }
  0x1c   :  { %v2607_v37 = vpack.c.bf16 %v2946_v34, %v362_v32  ;;  %v2637_v8 = vpack.c.bf16 %v2941_v1, %v2944_v57  ;;  %v95_v45 = vsel %vm81_vm0, %v41_v25, 0  ;;  %v98_v25 = vsel %vm81_vm0, %v42_v51, 0 }
  0x1d   :  { %v2147_v44 = vpack.c.bf16 %v2641_v13, %v2639_v9  ;;  %v2672_v18 = vsub.f32 %v86_v2, %v2644_v24  ;;  %v2676_v56 = vsub.f32 %v89_v14, %v2658_v36  ;;  %v2692_v14 = vand.u32 4294901760, %v98_v25 }
  0x1e   :  { %v307_v51 = vsub.f32 %v2456_v19, %v306_v58  ;;  %vm1015_vm2 = vcmask 392192  }
  0x1f   :  { %v2945_v2 = vand.u32 4294901760, %v2672_v18  ;;  %v2713_v58 = vsub.f32 %v98_v25, %v2692_v14 }
  0x20   :  { %2070 = vmatpush3.bf16.xpose.msra.mxu1 %v2508_v46 }
  0x21   :  { %2072 = vmatprep.subr.bf16.mxu1 %v2555_v4 }
  0x22   :  { %2134 = vmatpush3.bf16.xpose.msra.mxu0 %v2131_v50  ;;  %v2615_v50 = vpack.c.bf16 %v188_v31, %v185_v30  ;;  %v293_v31 = vsub.f32 %v2452_v17, %v292_v48  ;;  %v2943_v17 = vand.u32 4294901760, %v2639_v9  ;;  %v2942_v48 = vand.u32 4294901760, %v2641_v13 }
  0x23   :  { %2136 = vmatprep.subr.bf16.mxu0 %v2135_v7 }
  0x24   :  { %v294_v49 = vand.u32 4294901760, %v293_v31  ;;  %v2685_v1 = vpack.c.bf16 %v2942_v48, %v2943_v17  ;;  %v314_v48 = vsub.f32 %v2460_v21, %v313_v59  ;;  %v308_v21 = vand.u32 4294901760, %v307_v51 }
  0x26   :  { %v315_v59 = vand.u32 4294901760, %v314_v48  ;;  %v321_v48 = vsub.f32 %v2475_v28, %v320_v60  ;;  %v335_v60 = vsub.f32 %v2499_v41, %v334_v5  ;;  %v356_v5 = vsub.f32 %v2539_v63, %v355_v12 }
  0x28   :  { %2074 = vmatpush3.bf16.xpose.msra.mxu1 %v2555_v4  ;;  %v2091_v25 = vpack.c.bf16 %v315_v59, %v308_v21  ;;  %v322_v21 = vand.u32 4294901760, %v321_v48  ;;  %v2950_v48 = vand.u32 4294901760, %v2611_v39 }
  0x29   :  { %2076 = vmatprep.subr.bf16.mxu1 %v2589_v26 }
  0x2a   :  { %2138 = vmatpush3.bf16.xpose.msra.mxu0 %v2135_v7  ;;  %v40_v7 = vld [vmem:[%s2936_s1 + $0x18] sm:$0xff] }
  0x2b   :  { %2140 = vmatprep.subr.bf16.mxu0 %v2139_v27  ;;  %v92_v30 = vsel %vm81_vm0, %v40_v7, 0  ;;  %v2678_v7 = vand.u32 4294901760, %v95_v45 }
  0x2d   :  { %v2701_v17 = vsub.f32 %v95_v45, %v2678_v7 }
  0x2f   :  { %v271_v19 = vand.u32 4294901760, %v2701_v17 }
  0x30   :  { %2078 = vmatpush3.bf16.xpose.msra.mxu1 %v2589_v26 }
  0x31   :  { %2080 = vmatprep.subr.bf16.mxu1 %v2615_v50 }
  0x32   :  { %2142 = vmatpush3.bf16.xpose.msra.mxu0 %v2139_v27  ;;  %v2649_v27 = vpack.c.bf16 %v194_v55, %v191_v53  ;;  %v2667_v53 = vand.u32 4294901760, %v92_v30  ;;  %v301_v55 = vand.u32 4294901760, %v300_v35 }
  0x33   :  { %2144 = vmatprep.subr.bf16.mxu0 %v2143_v52 }
  0x34   :  { %v2689_v31 = vsub.f32 %v92_v30, %v2667_v53  ;;  %v2087_v35 = vpack.c.bf16 %v301_v55, %v294_v49  ;;  %v242_v30 = vsub.f32 %v2672_v18, %v2945_v2  ;;  %v281_v2 = vand.u32 4294901760, %v2713_v58 }
  0x36   :  { %v261_v57 = vand.u32 4294901760, %v2689_v31  ;;  %v243_v45 = vand.u32 4294901760, %v242_v30  ;;  %v282_v30 = vsub.f32 %v2713_v58, %v281_v2 }
  0x38   :  { %2082 = vmatpush3.bf16.xpose.msra.mxu1 %v2615_v50  ;;  %v262_v55 = vsub.f32 %v2689_v31, %v261_v57  ;;  %v283_v28 = vand.u32 4294901760, %v282_v30 }
  0x39   :  { %2084 = vmatprep.subr.bf16.mxu1 %v2649_v27 }
  0x3a   :  { %2146 = vmatpush3.bf16.xpose.msra.mxu0 %v2143_v52  ;;  %v2947_v52 = vand.u32 4294901760, %v2676_v56  ;;  %v263_v51 = vand.u32 4294901760, %v262_v55  ;;  %v2949_v55 = vand.u32 4294901760, %v2609_v38 }
  0x3b   :  { %2148 = vmatprep.subr.bf16.mxu0 %v2147_v44 }
  0x3c   :  { %v252_v49 = vsub.f32 %v2676_v56, %v2947_v52  ;;  %v272_v52 = vsub.f32 %v2701_v17, %v271_v19 }
  0x3e   :  { %v253_v34 = vand.u32 4294901760, %v252_v49  ;;  %v273_v49 = vand.u32 4294901760, %v272_v52 }
  0x40   :  { %2086 = vmatpush3.bf16.xpose.msra.mxu1 %v2649_v27 }
  0x41   :  { %2088 = vmatprep.subr.bf16.mxu1 %v2087_v35 }
  0x42   :  { %2150 = vmatpush3.bf16.xpose.msra.mxu0 %v2147_v44  ;;  %v328_v44 = vsub.f32 %v2477_v29, %v327_v61  ;;  %v342_v61 = vsub.f32 %v2501_v42, %v341_v6  ;;  %v349_v42 = vsub.f32 %v2537_v62, %v348_v11 }
  0x43   :  { %2152 = vmatprep.subr.bf16.mxu0 %v2450_v16 }
  0x44   :  { %v329_v59 = vand.u32 4294901760, %v328_v44  ;;  %v343_v52 = vand.u32 4294901760, %v342_v61  ;;  %v350_v6 = vand.u32 4294901760, %v349_v42 }
  0x46   :  { %v2095_v29 = vpack.c.bf16 %v329_v59, %v322_v21 }
  0x47   :  { %1752 = vmatmul.mubr.f32.vlgmr.msra.gmra.mrb[0].mxu1 %v243_v45  ;;  %v2948_v45 = vand.u32 4294901760, %v2585_v23 }
  0x48   :  { %2090 = vmatpush3.bf16.xpose.msra.mxu1 %v2087_v35  ;;  %1754 = vmatprep.mubr.f32.mxu1 %v253_v34  ;;  %v336_v34 = vand.u32 4294901760, %v335_v60  ;;  %v357_v35 = vand.u32 4294901760, %v356_v5 }
  0x49   :  { %1834 = vmatmul.mubr.f32.vlgmr.msra.gmra.mrb[0].mxu0 %v2672_v18  ;;  %2092 = vmatprep.subr.bf16.mxu1 %v2091_v25  ;;  %v370_v62 = vsub.f32 %v2585_v23, %v2948_v45 }
  0x4a   :  { %2154 = vmatpush3.bf16.xpose.msra.mxu0 %v2450_v16  ;;  %1836 = vmatprep.mubr.f32.mxu0 %v2676_v56  ;;  %v2099_v41 = vpack.c.bf16 %v343_v52, %v336_v34  ;;  %v2103_v43 = vpack.c.bf16 %v357_v35, %v350_v6 }
  0x4b   :  { %2156 = vmatprep.subr.bf16.mxu0 %v2458_v20  ;;  %1755 = vmatmul.mubr.f32.gmra.mrb[2].mxu1 %v263_v51  ;;  %v371_v11 = vand.u32 4294901760, %v370_v62  ;;  %v2951_v51 = vand.u32 4294901760, %v2639_v9 }
  0x4c   :  { %1757 = vmatprep.mubr.f32.mxu1 %v273_v49  ;;  %v2952_v49 = vand.u32 4294901760, %v2641_v13 }
  0x4d   :  { %1837 = vmatmul.mubr.f32.gmra.mrb[2].mxu0 %v2689_v31  ;;  %v391_v30 = vsub.f32 %v2639_v9, %v2951_v51  ;;  %v2953_v9 = vand.u32 4294901760, %v2672_v18  ;;  %v45_v18 = vld [vmem:[%s2937_s2 + $0x8] sm:$0xff]  ;;  %v50_v31 = vld [vmem:[%s2939_s4] sm:$0x3] }
  0x4e   :  { %1839 = vmatprep.mubr.f32.mxu0 %v2701_v17  ;;  %v2391_v17 = vmov 0  }
  0x4f   :  { %1758 = vmatmul.mubr.f32.gmra.mrb[4].mxu1 %v283_v28  ;;  %2353 = vset.pattern.permute.xlu0 %v2391_v17  ;;  %v43_v28 = vld [vmem:[%s2938_s3] sm:$0x3]  ;;  %s2395_s3 = smov [#allocation2]  }
  0x50   :  { %2094 = vmatpush3.bf16.xpose.msra.mxu1 %v2091_v25  ;;  %1792 = vmatprep.mubr.f32.mxu1 %v2496_v40  ;;  %v377_v25 = vsub.f32 %v2609_v38, %v2949_v55  ;;  %v398_v38 = vsub.f32 %v2641_v13, %v2952_v49  ;;  %v2954_v13 = vand.u32 4294901760, %v2676_v56  ;;  %v48_v56 = vld [vmem:[%s2937_s2 + $0x20] sm:$0xff]  ;;  %s1537_s24 = sshll.u32 %s2395_s3, 4  ;;  %s1538_s24 = int_to_ptr.vmem [resolvable:$true] %s1537_s24 }
  0x51   :  { %1840 = vmatmul.mubr.f32.gmra.mrb[4].mxu0 %v2713_v58  ;;  %2096 = vmatprep.subr.bf16.mxu1 %v2095_v29  ;;  %s2367_s25 = scalar_lea.vmem %s1538_s24, 32  ;;  %p2372_p1 = scmp.lt.s32.totalorder %s1538_s24, %s1538_s24 }
  0x52   :  { %2158 = vmatpush3.bf16.xpose.msra.mxu0 %v2458_v20  ;;  %1874 = vmatprep.mubr.f32.mxu0 %v231_v47  ;;  %v363_v47 = vsub.f32 %v2583_v22, %v362_v32  ;;  %v384_v22 = vsub.f32 %v2611_v39, %v2950_v48  ;;  %v378_v23 = vand.u32 4294901760, %v377_v25  ;;  %v392_v39 = vand.u32 4294901760, %v391_v30  ;;  %p2368_p0 = scmp.ne.s32.totalorder %s1538_s24, %s2367_s25  ;;  %p2373_p2 = scmp.lt.s32.totalorder %s2367_s25, %s2367_s25 }
  0x53   :  { %2160 = vmatprep.subr.bf16.mxu0 %v2484_v33  ;;  %v399_v21 = vand.u32 4294901760, %v398_v38  ;;  %2354 = vset.pattern.permute.xlu1 %v2391_v17 }
  0x54   :  { %v364_v63 = vand.u32 4294901760, %v363_v47  ;;  %v385_v32 = vand.u32 4294901760, %v384_v22  ;;  %p2374_p3 = por %p2373_p2, %p2372_p1 }
  0x55   :  { %v2115_v59 = vpack.c.bf16 %v399_v21, %v392_v39 }
  0x56   :  { %v2107_v12 = vpack.c.bf16 %v371_v11, %v364_v63  ;;  %v2111_v44 = vpack.c.bf16 %v385_v32, %v378_v23  ;;  %p2375_p4 = pnand %p2374_p3, %p2368_p0 }
  0x58   :  { %2098 = vmatpush3.bf16.xpose.msra.mxu1 %v2095_v29 }
  0x59   :  { %2100 = vmatprep.subr.bf16.mxu1 %v2099_v41 }
  0x5a   :  { %2162 = vmatpush3.bf16.xpose.msra.mxu0 %v2484_v33 }
  0x5b   :  { %2164 = vmatprep.subr.bf16.mxu0 %v2508_v46 }
  0x60   :  { %2102 = vmatpush3.bf16.xpose.msra.mxu1 %v2099_v41  ;;  %v1017_v41 = vsel %vm1015_vm2, %v43_v28, 0 }
  0x61   :  { %2104 = vmatprep.subr.bf16.mxu1 %v2103_v43  ;;  %v2871_v47 = vand.u32 4294901760, %v1017_v41 }
  0x62   :  { %2166 = vmatpush3.bf16.xpose.msra.mxu0 %v2508_v46 }
  0x63   :  { %2168 = vmatprep.subr.bf16.mxu0 %v2555_v4  ;;  %v2874_v11 = vsub.f32 %v1017_v41, %v2871_v47 }
  0x68   :  { %2106 = vmatpush3.bf16.xpose.msra.mxu1 %v2103_v43 }
  0x69   :  { %2108 = vmatprep.subr.bf16.mxu1 %v2107_v12 }
  0x6a   :  { %2170 = vmatpush3.bf16.xpose.msra.mxu0 %v2555_v4 }
  0x6b   :  { %2172 = vmatprep.subr.bf16.mxu0 %v2589_v26 }
  0x70   :  { %2110 = vmatpush3.bf16.xpose.msra.mxu1 %v2107_v12 }
  0x71   :  { %2112 = vmatprep.subr.bf16.mxu1 %v2111_v44 }
  0x72   :  { %2174 = vmatpush3.bf16.xpose.msra.mxu0 %v2589_v26 }
  0x73   :  { %2176 = vmatprep.subr.bf16.mxu0 %v2615_v50 }
  0x78   :  { %2114 = vmatpush3.bf16.xpose.msra.mxu1 %v2111_v44  ;;  %v1092_v44 = vand.u32 4294901760, %v2874_v11 }
  0x79   :  { %2116 = vmatprep.subr.bf16.mxu1 %v2115_v59 }
  0x7a   :  { %2178 = vmatpush3.bf16.xpose.msra.mxu0 %v2615_v50 }
  0x7b   :  { %2180 = vmatprep.subr.bf16.mxu0 %v2649_v27 }
  0x80   :  { %2118 = vmatpush3.bf16.xpose.msra.mxu1 %v2115_v59 }
  0x82   :  { %2182 = vmatpush3.bf16.xpose.msra.mxu0 %v2649_v27 }
  0x83   :  { %2184 = vmatprep.subr.bf16.mxu0 %v2524_v54 }
  0x87   :  { %1793 = vmatmul.mubr.f32.vlgmr.msra.gmra.mrb[0].mxu1 %v2644_v24 }
  0x88   :  { %1795 = vmatprep.mubr.f32.mxu1 %v2658_v36 }
  0x89   :  { %1875 = vmatmul.mubr.f32.vlgmr.msra.gmra.mrb[0].mxu0 %v2953_v9 }
  0x8a   :  { %2186 = vmatpush3.bf16.xpose.msra.mxu0 %v2524_v54  ;;  %1877 = vmatprep.mubr.f32.mxu0 %v2954_v13  ;;  %v44_v54 = vld [vmem:[%s2937_s2] sm:$0xff] }
  0x8b   :  { %2188 = vmatprep.subr.bf16.mxu0 %v2545_v0  ;;  %1796 = vmatmul.mubr.f32.gmra.mrb[2].mxu1 %v2667_v53 }
  0x8c   :  { %1798 = vmatprep.mubr.f32.mxu1 %v2678_v7  ;;  %53 = vperm.xlu0 %2353, %v44_v54  }
  0x8d   :  { %1878 = vmatmul.mubr.f32.gmra.mrb[2].mxu0 %v261_v57  ;;  %v46_v57 = vld [vmem:[%s2937_s2 + $0x10] sm:$0xff] }
  0x8e   :  { %1880 = vmatprep.mubr.f32.mxu0 %v271_v19  ;;  %63 = vperm.xlu1 %2354, %v46_v57  }
  0x8f   :  { %1799 = vmatmul.mubr.f32.gmra.mrb[4].mxu1 %v2692_v14 }
  0x90   :  { %58 = vperm.xlu0 %2353, %v45_v18  }
  0x91   :  { %1881 = vmatmul.mubr.f32.gmra.mrb[4].mxu0 %v281_v2  ;;  %v49_v2 = vld [vmem:[%s2937_s2 + $0x28] sm:$0xff] }
  0x92   :  { %2190 = vmatpush3.bf16.xpose.msra.mxu0 %v2545_v0  ;;  %1915 = vmatprep.mubr.f32.mxu0 %v2496_v40  ;;  %v47_v0 = vld [vmem:[%s2937_s2 + $0x18] sm:$0xff] }
  0x93   :  { %2192 = vmatprep.subr.bf16.mxu0 %v2553_v3  ;;  %68 = vperm.xlu1 %2354, %v47_v0   ;;  %v1093_v0 = vsub.f32 %v2874_v11, %v1092_v44 }
  0x94   :  { %73 = vperm.xlu0 %2353, %v48_v56  }
  0x97   :  { %78 = vperm.xlu1 %2354, %v49_v2  }
  0x98   :  { %1012 = vperm.xlu0 %2353, %v50_v31  }
  0x9a   :  { %2194 = vmatpush3.bf16.xpose.msra.mxu0 %v2553_v3 }
  0x9b   :  { %2196 = vmatprep.subr.bf16.mxu0 %v2565_v10 }
  0xa2   :  { %2198 = vmatpush3.bf16.xpose.msra.mxu0 %v2565_v10  ;;  %v2394_v10 = vmov 0.0  }
  0xa3   :  { %2200 = vmatprep.subr.bf16.mxu0 %v2581_v15  ;;  %1977 = vmatprep.mubr.msk.f32.mxu1 %vm2393_vm1, %v2394_v10 }
  0xaa   :  { %2202 = vmatpush3.bf16.xpose.msra.mxu0 %v2581_v15 }
  0xab   :  { %2204 = vmatprep.subr.bf16.mxu0 %v2607_v37 }
  0xb2   :  { %2206 = vmatpush3.bf16.xpose.msra.mxu0 %v2607_v37 }
  0xb3   :  { %2208 = vmatprep.subr.bf16.mxu0 %v2637_v8 }
  0xba   :  { %2210 = vmatpush3.bf16.xpose.msra.mxu0 %v2637_v8 }
  0xbb   :  { %2212 = vmatprep.subr.bf16.mxu0 %v2685_v1 }
  0xc2   :  { %2214 = vmatpush3.bf16.xpose.msra.mxu0 %v2685_v1 }
  0xc3   :  { %2216 = vmatprep.subr.bf16.mxu0 %v2450_v16 }
  0xc9   :  { %1916 = vmatmul.mubr.f32.vlgmr.msra.gmra.mrb[0].mxu0 %v2644_v24 }
  0xca   :  { %2218 = vmatpush3.bf16.xpose.msra.mxu0 %v2450_v16  ;;  %1918 = vmatprep.mubr.f32.mxu0 %v2658_v36 }
  0xcb   :  { %2220 = vmatprep.subr.bf16.mxu0 %v2458_v20 }
  0xcd   :  { %1919 = vmatmul.mubr.f32.gmra.mrb[2].mxu0 %v2667_v53 }
  0xce   :  { %1921 = vmatprep.mubr.f32.mxu0 %v2678_v7 }
  0xd1   :  { %1922 = vmatmul.mubr.f32.gmra.mrb[4].mxu0 %v2692_v14 }
  0xd2   :  { %2222 = vmatpush3.bf16.xpose.msra.mxu0 %v2458_v20  ;;  %1956 = vmatprep.mubr.f32.mxu0 %v2496_v40 }
  0xd3   :  { %2224 = vmatprep.subr.bf16.mxu0 %v2484_v33 }
  0xda   :  { %2226 = vmatpush3.bf16.xpose.msra.mxu0 %v2484_v33 }
  0xdb   :  { %2228 = vmatprep.subr.bf16.mxu0 %v2508_v46 }
  0xe2   :  { %2230 = vmatpush3.bf16.xpose.msra.mxu0 %v2508_v46 }
  0xe3   :  { %2232 = vmatprep.subr.bf16.mxu0 %v2555_v4 }
  0xea   :  { %2234 = vmatpush3.bf16.xpose.msra.mxu0 %v2555_v4  ;;  %v2392_v4 = vmov 0.0|0.0  }
  0xeb   :  { %2236 = vmatprep.subr.bf16.mxu0 %v2589_v26  ;;  %2247 = vmatprep.subr.bf16.mxu1 %v2392_v4 }
  0xf2   :  { %2238 = vmatpush3.bf16.xpose.msra.mxu0 %v2589_v26 }
  0xf3   :  { %2240 = vmatprep.subr.bf16.mxu0 %v2615_v50 }
  0xfa   :  { %2242 = vmatpush3.bf16.xpose.msra.mxu0 %v2615_v50 }
  0xfb   :  { %2244 = vmatprep.subr.bf16.mxu0 %v2649_v27 }
 0x102   :  { %2246 = vmatpush3.bf16.xpose.msra.mxu0 %v2649_v27 }
 0x109   :  { %1957 = vmatmul.mubr.f32.vlgmr.msra.gmra.mrb[0].mxu0 %v2644_v24 }
 0x10a   :  { %1959 = vmatprep.mubr.f32.mxu0 %v2658_v36 }
 0x10b   :  { %v54_v15 = vpop.permute.xlu0 %53 }
 0x10d   :  { %1960 = vmatmul.mubr.f32.gmra.mrb[2].mxu0 %v2667_v53  ;;  %v64_v26 = vpop.permute.xlu1 %63 }
 0x10e   :  { %1962 = vmatprep.mubr.f32.mxu0 %v2678_v7 }
 0x10f   :  { %v59_v37 = vpop.permute.xlu0 %58 }
 0x111   :  { %1963 = vmatmul.mubr.f32.gmra.mrb[4].mxu0 %v2692_v14 }
 0x112   :  { %v69_v50 = vpop.permute.xlu1 %68 }
 0x113   :  { %v74_v34 = vpop.permute.xlu0 %73 }
 0x116   :  { %v79_v19 = vpop.permute.xlu1 %78 }
 0x15a   :  { %v1794_v16 = vpop.f32.mrb[0].mxu1 }
 0x15b   :  { %v436_v20 = vpop.f32.mrb[1].mxu1  ;;  %v2301_v1 = vadd.f32 %v1794_v16, %v59_v37 }
 0x15c   :  { %v2303_v8 = vadd.f32 %v436_v20, %v54_v15 }
 0x15e   :  { %v1797_v33 = vpop.f32.mrb[2].mxu1 }
 0x15f   :  { %v448_v40 = vpop.f32.mrb[3].mxu1  ;;  %v2305_v7 = vadd.f32 %v1797_v33, %v69_v50  ;;  %v1094_v50 = vand.u32 4294901760, %v1093_v0 }
 0x160   :  { %v2307_v14 = vadd.f32 %v448_v40, %v64_v26 }
 0x162   :  { %v1800_v46 = vpop.f32.mrb[4].mxu1 }
 0x163   :  { %v460_v3 = vpop.f32.mrb[5].mxu1  ;;  %v2309_v52 = vadd.f32 %v1800_v46, %v79_v19 }
 0x164   :  { %v2311_v42 = vadd.f32 %v460_v3, %v74_v34 }
 0x1dc   :  { %v1958_v24 = vpop.f32.mrb[0].mxu0 }
 0x1dd   :  { %v2302_v27 = vadd.f32 %v2301_v1, %v1958_v24  ;;  %v970_v36 = vpop.f32.mrb[1].mxu0 }
 0x1de   :  { %v2304_v53 = vadd.f32 %v2303_v8, %v970_v36 }
 0x1df   :  { %2355 = vtanh.f32 %v2302_v27 }
 0x1e0   :  { %2357 = vtanh.f32 %v2304_v53  ;;  %v1961_v58 = vpop.f32.mrb[2].mxu0 }
 0x1e1   :  { %v2306_v29 = vadd.f32 %v2305_v7, %v1961_v58  ;;  %v982_v60 = vpop.f32.mrb[3].mxu0 }
 0x1e2   :  { %v2308_v61 = vadd.f32 %v2307_v14, %v982_v60 }
 0x1e3   :  { %2359 = vtanh.f32 %v2306_v29 }
 0x1e4   :  { %2361 = vtanh.f32 %v2308_v61  ;;  %v1964_v5 = vpop.f32.mrb[4].mxu0  ;;  %v1013_v61 = vpop.permute.xlu0 %1012 }
 0x1e5   :  { %v2310_v6 = vadd.f32 %v2309_v52, %v1964_v5  ;;  %v994_v35 = vpop.f32.mrb[5].mxu0 }
 0x1e6   :  { %v2312_v43 = vadd.f32 %v2311_v42, %v994_v35 }
 0x1e7   :  { %2363 = vtanh.f32 %v2310_v6 }
 0x1e8   :  { %2365 = vtanh.f32 %v2312_v43 }
 0x1e9   :  { %v2356_v45 = vpop.eup %2355 }
 0x1ea   :  { %v2358_v62 = vpop.eup %2357  ;;  %v1023_v63 = vand.u32 4294901760, %v2356_v45 }
 0x1eb   :  { %v1020_v12 = vand.u32 4294901760, %v2358_v62 }
 0x1ec   :  { %v1109_v55 = vsub.f32 %v2356_v45, %v1023_v63 }
 0x1ed   :  { %v2360_v25 = vpop.eup %2359  ;;  %v2876_v48 = vpack.c.bf16 %v1023_v63, %v1020_v12  ;;  %v1102_v22 = vsub.f32 %v2358_v62, %v1020_v12 }
 0x1ee   :  { %v2362_v23 = vpop.eup %2361  ;;  %v1029_v32 = vand.u32 4294901760, %v2360_v25  ;;  %v1110_v51 = vand.u32 4294901760, %v1109_v55 }
 0x1ef   :  { %2249 = vmatpush3.bf16.msra.mxu1 %v2876_v48  ;;  %v1026_v30 = vand.u32 4294901760, %v2362_v23  ;;  %v1103_v49 = vand.u32 4294901760, %v1102_v22  ;;  %v2266_v38 = vpack.c.bf16 %v1109_v55, %v1102_v22 }
 0x1f0   :  { %2250 = vmatprep.subr.bf16.mxu1 %v2392_v4  ;;  %v1123_v39 = vsub.f32 %v2360_v25, %v1029_v32  ;;  %v1111_v21 = vsub.f32 %v1109_v55, %v1110_v51 }
 0x1f1   :  { %v2364_v59 = vpop.eup %2363  ;;  %v2881_v9 = vpack.c.bf16 %v1029_v32, %v1026_v30  ;;  %v1116_v13 = vsub.f32 %v2362_v23, %v1026_v30  ;;  %v1104_v54 = vsub.f32 %v1102_v22, %v1103_v49  ;;  %v2284_v57 = vpack.c.bf16 %v1110_v51, %v1103_v49 }
 0x1f2   :  { %v2366_v17 = vpop.eup %2365  ;;  %v1035_v18 = vand.u32 4294901760, %v2364_v59  ;;  %v1112_v56 = vand.u32 4294901760, %v1111_v21  ;;  %v1124_v2 = vand.u32 4294901760, %v1123_v39 }
 0x1f3   :  { %2252 = vmatpush3.bf16.msra.mxu1 %v2881_v9  ;;  %v1032_v31 = vand.u32 4294901760, %v2366_v17  ;;  %v1105_v16 = vand.u32 4294901760, %v1104_v54  ;;  %v1117_v20 = vand.u32 4294901760, %v1116_v13  ;;  %v2269_v33 = vpack.c.bf16 %v1123_v39, %v1116_v13 }
 0x1f4   :  { %2253 = vmatprep.subr.bf16.mxu1 %v2392_v4  ;;  %v1137_v40 = vsub.f32 %v2364_v59, %v1035_v18  ;;  %v1125_v46 = vsub.f32 %v1123_v39, %v1124_v2 }
 0x1f5   :  { %v2254_v3 = vpack.c.bf16 %v1035_v18, %v1032_v31  ;;  %v1130_v15 = vsub.f32 %v2366_v17, %v1032_v31  ;;  %v2257_v26 = vpack.c.bf16 %v1112_v56, %v1105_v16  ;;  %v1118_v37 = vsub.f32 %v1116_v13, %v1117_v20 }
 0x1f6   :  { %v1126_v1 = vand.u32 4294901760, %v1125_v46  ;;  %v1138_v8 = vand.u32 4294901760, %v1137_v40  ;;  %v2287_v24 = vpack.c.bf16 %v1124_v2, %v1117_v20 }
 0x1f7   :  { %2255 = vmatpush3.bf16.msra.mxu1 %v2254_v3  ;;  %v1119_v27 = vand.u32 4294901760, %v1118_v37  ;;  %v1131_v36 = vand.u32 4294901760, %v1130_v15  ;;  %v2272_v53 = vpack.c.bf16 %v1137_v40, %v1130_v15 }
 0x1f8   :  { %2256 = vmatprep.subr.bf16.mxu1 %v2392_v4  ;;  %v1139_v7 = vsub.f32 %v1137_v40, %v1138_v8 }
 0x1f9   :  { %v2260_v14 = vpack.c.bf16 %v1126_v1, %v1119_v27  ;;  %v1132_v19 = vsub.f32 %v1130_v15, %v1131_v36  ;;  %v2290_v58 = vpack.c.bf16 %v1138_v8, %v1131_v36 }
 0x1fa   :  { %1978 = vmatmul.mubr.f32.vlgmr.msra.gmra.mrb[6].mxu1 %v1094_v50  ;;  %v1140_v28 = vand.u32 4294901760, %v1139_v7 }
 0x1fb   :  { %2258 = vmatpush3.bf16.msra.mxu1 %v2257_v26  ;;  %v1133_v29 = vand.u32 4294901760, %v1132_v19  ;;  %1992 = vmatprep.mubr.msk.f32.mxu1 %vm2393_vm1, %v2394_v10 }
 0x1fc   :  { %2259 = vmatprep.subr.bf16.mxu1 %v2392_v4 }
 0x1fd   :  { %v2263_v60 = vpack.c.bf16 %v1140_v28, %v1133_v29 }
 0x1ff   :  { %2261 = vmatpush3.bf16.msra.mxu1 %v2260_v14 }
 0x200   :  { %2262 = vmatprep.subr.bf16.mxu1 %v2392_v4 }
 0x203   :  { %2264 = vmatpush3.bf16.msra.mxu1 %v2263_v60 }
 0x204   :  { %2265 = vmatprep.subr.bf16.mxu1 %v2392_v4 }
 0x206   :  { %1993 = vmatmul.mubr.f32.vlgmr.msra.gmra.mrb[6].mxu1 %v2871_v47 }
 0x207   :  { %2267 = vmatpush3.bf16.msra.mxu1 %v2266_v38  ;;  %2007 = vmatprep.mubr.msk.f32.mxu1 %vm2393_vm1, %v2394_v10 }
 0x208   :  { %2268 = vmatprep.subr.bf16.mxu1 %v2392_v4 }
 0x20b   :  { %2270 = vmatpush3.bf16.msra.mxu1 %v2269_v33 }
 0x20c   :  { %2271 = vmatprep.subr.bf16.mxu1 %v2392_v4 }
 0x20f   :  { %2273 = vmatpush3.bf16.msra.mxu1 %v2272_v53 }
 0x210   :  { %2274 = vmatprep.subr.bf16.mxu1 %v2392_v4 }
 0x212   :  { %2008 = vmatmul.mubr.f32.vlgmr.msra.gmra.mrb[6].mxu1 %v2874_v11 }
 0x213   :  { %2276 = vmatpush3.bf16.msra.mxu1 %v2876_v48  ;;  %2022 = vmatprep.mubr.msk.f32.mxu1 %vm2393_vm1, %v2394_v10 }
 0x214   :  { %2277 = vmatprep.subr.bf16.mxu1 %v2392_v4 }
 0x217   :  { %2279 = vmatpush3.bf16.msra.mxu1 %v2881_v9 }
 0x218   :  { %2280 = vmatprep.subr.bf16.mxu1 %v2392_v4 }
 0x21b   :  { %2282 = vmatpush3.bf16.msra.mxu1 %v2254_v3 }
 0x21c   :  { %2283 = vmatprep.subr.bf16.mxu1 %v2392_v4 }
 0x21e   :  { %2023 = vmatmul.mubr.f32.vlgmr.msra.gmra.mrb[6].mxu1 %v1092_v44 }
 0x21f   :  { %2285 = vmatpush3.bf16.msra.mxu1 %v2284_v57  ;;  %2037 = vmatprep.mubr.msk.f32.mxu1 %vm2393_vm1, %v2394_v10 }
 0x220   :  { %2286 = vmatprep.subr.bf16.mxu1 %v2392_v4 }
 0x223   :  { %2288 = vmatpush3.bf16.msra.mxu1 %v2287_v24 }
 0x224   :  { %2289 = vmatprep.subr.bf16.mxu1 %v2392_v4 }
 0x227   :  { %2291 = vmatpush3.bf16.msra.mxu1 %v2290_v58 }
 0x228   :  { %2292 = vmatprep.subr.bf16.mxu1 %v2392_v4 }
 0x22a   :  { %2038 = vmatmul.mubr.f32.vlgmr.msra.gmra.mrb[6].mxu1 %v2871_v47 }
 0x22b   :  { %2294 = vmatpush3.bf16.msra.mxu1 %v2876_v48  ;;  %2052 = vmatprep.mubr.msk.f32.mxu1 %vm2393_vm1, %v2394_v10 }
 0x22c   :  { %2295 = vmatprep.subr.bf16.mxu1 %v2392_v4 }
 0x22f   :  { %2297 = vmatpush3.bf16.msra.mxu1 %v2881_v9 }
 0x230   :  { %2298 = vmatprep.subr.bf16.mxu1 %v2392_v4 }
 0x233   :  { %2300 = vmatpush3.bf16.msra.mxu1 %v2254_v3 }
 0x236   :  { %2053 = vmatmul.mubr.f32.vlgmr.msra.gmra.mrb[6].mxu1 %v2871_v47 }
 0x309   :  { %v1526_v34 = vpop.f32.mrb[6].mxu1 }
 0x30a   :  { %v2313_v52 = vadd.f32 %v1526_v34, %v1013_v61  ;;  %v2054_v41 = vpop.f32.mrb[7].mxu1 }
 0x30c   :  { %1530 = vst [vmem:[#allocation2] sm:$0x3] %v2313_v52 }
 0x30d   :  { %2378 = shalt.err (!%p2375_p4)
}
 0x30e   :  { %s2379_s27 = scalar_lea.hbm %s2940_s5, 32 }
 0x30f   :  { %p2380_p5 = scmp.ne.s32.totalorder %s2940_s5, %s2379_s27  ;;  %p2383_p6 = scmp.lt.u32.totalorder %s2379_s27, %s2940_s5 }
 0x311   :  { %p2385_p7 = pnand %p2383_p6, %p2380_p5 }
 0x313   :  { %2388 = shalt.err (!%p2385_p7)
}
 0x314   :  { %1540 = dma.vmem_to_hbm [thread:$0]  %s1538_s24, 32, %s2940_s5, [#allocation3]  }
 0x315   :  { %2389 = dma.done.wait [#allocation3], 32  }
 0x316   :  { %2390 = vsyncadd [#allocation3], 4294967264 }
 0x317   :  { %1544 = vsyncpa [#allocation3], 1 }

</bundles_post_ra>
